<compile_context>
chip_gen: v5e
topology: v5e:2x2
jax: 0.10.0
libtpu: 0.0.40
codegen_flags: <defaults>
</compile_context>

<pallas_src>
import functools

import jax
import jax.numpy as jnp
from jax.experimental import pallas as pl
from jax.experimental.pallas import tpu as pltpu


def _fused_linear_leakyrelu_kernel(pe_ref, dn_ref, wt_ref, wb_ref, b_ref, o_ref,
                                   *, negative_slope, precision):
    # pe_ref: (TM, pe_feat)    point_edge tile (full width; unused columns meet
    #                          zero weight rows, so no in-VMEM slice/relayout)
    # dn_ref: (TM, dn_feat)    distribution_node tile
    # wt_ref: (pe_feat, out_c) zero-padded top weight block (rows >= out_c == 0)
    # wb_ref: (dn_feat, out_c) bottom weight block
    # b_ref : (1, out_c)       f32 bias
    # o_ref : (TM, out_c)
    y = jnp.dot(pe_ref[...], wt_ref[...],
                preferred_element_type=jnp.float32, precision=precision)
    y += jnp.dot(dn_ref[...], wb_ref[...],
                 preferred_element_type=jnp.float32, precision=precision)
    y += b_ref[...]
    # LeakyReLU epilogue in f32 (VPU f32 path exists on every generation).
    o_ref[...] = jnp.where(y >= 0, y, negative_slope * y).astype(o_ref.dtype)


def fused_linear_leakyrelu(pe2d, dn2d, weight_t, bias, *, out_c,
                           negative_slope=0.01, tile_m=8192, out_dtype=None):
    """Fused concat + Linear + LeakyReLU.

    pe2d:     (M, pe_feat) activations; only the first out_c columns contribute
              (the rest hit zero-padded weight rows).
    dn2d:     (M, dn_feat) activations.
    weight_t: (in_c, out_c) transposed nn.Linear weight, in_c = out_c + dn_feat.
    bias:     (out_c,)
    Returns   (M, out_c) in out_dtype (defaults to pe2d.dtype).
    """
    M, pe_feat = pe2d.shape
    dn_feat = dn2d.shape[1]
    in_c = weight_t.shape[0]
    assert weight_t.shape[1] == out_c
    assert in_c == out_c + dn_feat, "concat width must equal Linear in_features"
    assert pe_feat >= out_c

    if out_dtype is None:
        out_dtype = pe2d.dtype

    # Split W^T; zero-pad the top block to pe_feat rows.  The extra K rows are
    # free on the MXU and eliminate the per-step in-kernel lane slice.
    w_top = weight_t[:out_c, :]
    if pe_feat > out_c:
        w_top = jnp.concatenate(
            [w_top, jnp.zeros((pe_feat - out_c, out_c), weight_t.dtype)], axis=0)
    w_top = w_top.astype(pe2d.dtype)
    w_bot = weight_t[out_c:, :].astype(dn2d.dtype)
    b2d = bias.reshape(1, out_c).astype(jnp.float32)

    # f32 activations -> exact MXU passes for parity with the f32 reference;
    # bf16 activations are already a single MXU pass.
    precision = (jax.lax.Precision.HIGHEST
                 if pe2d.dtype == jnp.float32 else None)

    # --- Tile sizing (mem-bound: amortize ~0.35us/step pipeline overhead) ----
    # Per-row VMEM cost is lane-padded to 128 lanes, so at tile_m=8192 the
    # double-buffered footprint is ~16-24 MiB depending on dtype — under the
    # explicit 32 MiB limit below on v5e/v6e/v7x alike (v7x physical = 64 MiB).
    if M > tile_m:
        tm = tile_m                               # multiple of 8; ragged last tile
    elif M >= 2048:
        # Moderate M: keep >=2 grid steps so both v7x TensorCores get work and
        # the DMA/compute pipeline stays double-buffered.
        tm = ((M + 1) // 2 + 7) // 8 * 8
    else:
        tm = M                                    # full-extent block: always legal
    grid_m = pl.cdiv(M, tm)

    kernel = functools.partial(_fused_linear_leakyrelu_kernel,
                               negative_slope=negative_slope,
                               precision=precision)

    def _isz(d):
        return jnp.dtype(d).itemsize

    flops = 2 * M * (pe_feat + dn_feat) * out_c
    bytes_accessed = (M * pe_feat * _isz(pe2d.dtype)
                      + M * dn_feat * _isz(dn2d.dtype)
                      + (pe_feat + dn_feat) * out_c * _isz(w_top.dtype)
                      + out_c * 4
                      + M * out_c * _isz(out_dtype))

    return pl.pallas_call(
        kernel,
        out_shape=jax.ShapeDtypeStruct((M, out_c), out_dtype),
        grid=(grid_m,),
        in_specs=[
            # Streamed (double-buffered) activation tiles:
            pl.BlockSpec((tm, pe_feat), lambda i: (i, 0)),
            pl.BlockSpec((tm, dn_feat), lambda i: (i, 0)),
            # VMEM-resident parameters (same block every step -> no re-DMA):
            pl.BlockSpec((pe_feat, out_c), lambda i: (0, 0)),
            pl.BlockSpec((dn_feat, out_c), lambda i: (0, 0)),
            pl.BlockSpec((1, out_c), lambda i: (0, 0)),
        ],
        out_specs=pl.BlockSpec((tm, out_c), lambda i: (i, 0)),
        compiler_params=pltpu.CompilerParams(
            dimension_semantics=("parallel",),
            vmem_limit_bytes=32 * 1024 * 1024),
        cost_estimate=pl.CostEstimate(
            flops=flops, transcendentals=0, bytes_accessed=bytes_accessed),
    )(pe2d, dn2d, w_top, w_bot, b2d)


class LinearTransformation:
    """JAX/Pallas port of the PyTorch LinearTransformation module."""

    def __init__(self, in_c, out_c, key, negative_slope=0.01):
        # TODO(synk): some DPGN variants use LeakyReLU(0.2); nn.LeakyReLU()'s
        # default slope 0.01 is used here to match the reference module.
        self.in_c = in_c
        self.out_c = out_c
        self.negative_slope = negative_slope
        k1, k2 = jax.random.split(key)
        bound = 1.0 / (in_c ** 0.5)            # nn.Linear default init range
        # Stored transposed (in_c, out_c); kept f32, cast per call to the
        # activation dtype (bf16 activations -> bf16 weights inside the kernel).
        self.weight_t = jax.random.uniform(
            k1, (in_c, out_c), jnp.float32, minval=-bound, maxval=bound)
        self.bias = jax.random.uniform(
            k2, (out_c,), jnp.float32, minval=-bound, maxval=bound)

    def __call__(self, point_edge, distribution_node):
        # point_edge:        (B, N, F)   with F >= out_c
        # distribution_node: (B, N, D)   with out_c + D == in_c
        B, N = point_edge.shape[0], point_edge.shape[1]
        pe2d = point_edge.reshape(B * N, point_edge.shape[2])        # free reshape
        dn2d = distribution_node.reshape(B * N, distribution_node.shape[2])
        y = fused_linear_leakyrelu(
            pe2d, dn2d, self.weight_t, self.bias, out_c=self.out_c,
            negative_slope=self.negative_slope, out_dtype=point_edge.dtype)
        return y.reshape(B, N, self.out_c)


if __name__ == "__main__":
    key = jax.random.PRNGKey(0)
    k_pe, k_dn, k_mod = jax.random.split(key, 3)

    # Small shapes consistent with the module's forward:
    B, N = 2, 8
    out_c = 32
    dn_feat = 16
    in_c = out_c + dn_feat          # concat width must match Linear in_features
    pe_feat = 40                    # >= out_c; extra cols hit zero weight rows

    point_edge = jax.random.normal(k_pe, (B, N, pe_feat), dtype=jnp.float32)
    distribution_node = jax.random.normal(k_dn, (B, N, dn_feat), dtype=jnp.float32)

    module = LinearTransformation(in_c, out_c, k_mod)

    # Pure-JAX reference (explicit concat + single matmul), HIGHEST precision.
    cat = jnp.concatenate([point_edge[:, :, :out_c], distribution_node], axis=2)
    x = cat.reshape(B * N, in_c)
    ref = jnp.dot(x, module.weight_t,
                  precision=jax.lax.Precision.HIGHEST) + module.bias
    ref = jnp.where(ref >= 0, ref, 0.01 * ref).reshape(B, N, out_c)

    # 1) f32 I/O path — strict parity with the f32 reference.
    out_f32 = jax.block_until_ready(module(point_edge, distribution_node))
    assert out_f32.shape == (B, N, out_c)
    assert out_f32.dtype == jnp.float32
    assert jnp.allclose(out_f32, ref, atol=1e-5, rtol=1e-5)

    # 2) bf16 I/O path (activations arrive bf16, as from an upstream bf16
    #    producer): halves HBM traffic; compared loosely against the f32 ref.
    out_bf16 = jax.block_until_ready(
        module(point_edge.astype(jnp.bfloat16),
               distribution_node.astype(jnp.bfloat16)))
    assert out_bf16.shape == (B, N, out_c)
    assert out_bf16.dtype == jnp.bfloat16
    assert jnp.allclose(out_bf16.astype(jnp.float32), ref, atol=5e-2, rtol=5e-2)

    print("KERNEL_OK")
</pallas_src>

<mosaic_0001>
module attributes {stable_mosaic.version = 11 : i64} {
  func.func @_fused_linear_leakyrelu_kernel(%arg0: i32, %arg1: memref<16x40xf32, #tpu.memory_space<vmem>>, %arg2: memref<16x16xf32, #tpu.memory_space<vmem>>, %arg3: memref<40x32xf32, #tpu.memory_space<vmem>>, %arg4: memref<16x32xf32, #tpu.memory_space<vmem>>, %arg5: memref<1x32xf32, #tpu.memory_space<vmem>>, %arg6: memref<16x32xf32, #tpu.memory_space<vmem>>) attributes {dimension_semantics = [#tpu.dimension_semantics<parallel>], iteration_bounds = array<i64: 1>, scalar_prefetch = 0 : i64, scratch_operands = 0 : i64, tpu.core_type = #tpu.core_type<tc>, window_params = [{transform_indices = @transform_0, window_bounds = array<i64: 16, 40>}, {transform_indices = @transform_1, window_bounds = array<i64: 16, 16>}, {pipeline_mode = #tpu.pipeline_mode<synchronous>, transform_indices = @transform_2, window_bounds = array<i64: 40, 32>}, {pipeline_mode = #tpu.pipeline_mode<synchronous>, transform_indices = @transform_3, window_bounds = array<i64: 16, 32>}, {pipeline_mode = #tpu.pipeline_mode<synchronous>, transform_indices = @transform_4, window_bounds = array<i64: 1, 32>}, {transform_indices = @transform_5, window_bounds = array<i64: 16, 32>}]} {
    %c0 = arith.constant 0 : index
    %c0_0 = arith.constant 0 : index
    %0 = vector.load %arg1[%c0, %c0_0] : memref<16x40xf32, #tpu.memory_space<vmem>>, vector<16x40xf32>
    %c0_1 = arith.constant 0 : index
    %c0_2 = arith.constant 0 : index
    %1 = vector.load %arg3[%c0_1, %c0_2] : memref<40x32xf32, #tpu.memory_space<vmem>>, vector<40x32xf32>
    %cst = arith.constant dense<0.000000e+00> : vector<16x32xf32>
    %2 = tpu.matmul %0, %1, %cst {dimension_numbers = #tpu.dot_dimension_numbers<[1], [0], [0], [1], [0, 0, 1, 1], [], []>, precision = #tpu.contract_precision<fp32>} : vector<16x40xf32>, vector<40x32xf32>, vector<16x32xf32> -> vector<16x32xf32>
    %c0_3 = arith.constant 0 : index
    %c0_4 = arith.constant 0 : index
    %3 = vector.load %arg2[%c0_3, %c0_4] : memref<16x16xf32, #tpu.memory_space<vmem>>, vector<16x16xf32>
    %c0_5 = arith.constant 0 : index
    %c0_6 = arith.constant 0 : index
    %4 = vector.load %arg4[%c0_5, %c0_6] : memref<16x32xf32, #tpu.memory_space<vmem>>, vector<16x32xf32>
    %cst_7 = arith.constant dense<0.000000e+00> : vector<16x32xf32>
    %5 = tpu.matmul %3, %4, %cst_7 {dimension_numbers = #tpu.dot_dimension_numbers<[1], [0], [0], [1], [0, 0, 1, 1], [], []>, precision = #tpu.contract_precision<fp32>} : vector<16x16xf32>, vector<16x32xf32>, vector<16x32xf32> -> vector<16x32xf32>
    %6 = arith.addf %2, %5 : vector<16x32xf32>
    %c0_8 = arith.constant 0 : index
    %c0_9 = arith.constant 0 : index
    %7 = vector.load %arg5[%c0_8, %c0_9] : memref<1x32xf32, #tpu.memory_space<vmem>>, vector<1x32xf32>
    %8 = vector.broadcast %7 : vector<1x32xf32> to vector<16x32xf32>
    %9 = arith.addf %6, %8 : vector<16x32xf32>
    %cst_10 = arith.constant 0.000000e+00 : f32
    %10 = vector.broadcast %cst_10 : f32 to vector<16x32xf32>
    %11 = arith.cmpf oge, %9, %10 : vector<16x32xf32>
    %cst_11 = arith.constant 0.00999999977 : f32
    %12 = vector.broadcast %cst_11 : f32 to vector<16x32xf32>
    %13 = arith.mulf %12, %9 : vector<16x32xf32>
    %14 = arith.select %11, %9, %13 : vector<16x32xi1>, vector<16x32xf32>
    %c0_12 = arith.constant 0 : index
    %c0_13 = arith.constant 0 : index
    %15 = vector.load %arg6[%c0_12, %c0_13] : memref<16x32xf32, #tpu.memory_space<vmem>>, vector<16x32xf32>
    tpu.vector_store %arg6[%c0_12, %c0_13], %14 {strides = array<i32>} : memref<16x32xf32, #tpu.memory_space<vmem>>, vector<16x32xf32>,
    return
  }
  func.func @transform_0(%arg0: i32) -> (i32, i32) {
    %c0_i32 = arith.constant 0 : i32
    %c0_i32_0 = arith.constant 0 : i32
    return %arg0, %c0_i32 : i32, i32
  }
  func.func @transform_1(%arg0: i32) -> (i32, i32) {
    %c0_i32 = arith.constant 0 : i32
    %c0_i32_0 = arith.constant 0 : i32
    return %arg0, %c0_i32 : i32, i32
  }
  func.func @transform_2(%arg0: i32) -> (i32, i32) {
    %c0_i32 = arith.constant 0 : i32
    %c0_i32_0 = arith.constant 0 : i32
    %c0_i32_1 = arith.constant 0 : i32
    return %c0_i32, %c0_i32_0 : i32, i32
  }
  func.func @transform_3(%arg0: i32) -> (i32, i32) {
    %c0_i32 = arith.constant 0 : i32
    %c0_i32_0 = arith.constant 0 : i32
    %c0_i32_1 = arith.constant 0 : i32
    return %c0_i32, %c0_i32_0 : i32, i32
  }
  func.func @transform_4(%arg0: i32) -> (i32, i32) {
    %c0_i32 = arith.constant 0 : i32
    %c0_i32_0 = arith.constant 0 : i32
    %c0_i32_1 = arith.constant 0 : i32
    return %c0_i32, %c0_i32_0 : i32, i32
  }
  func.func @transform_5(%arg0: i32) -> (i32, i32) {
    %c0_i32 = arith.constant 0 : i32
    %c0_i32_0 = arith.constant 0 : i32
    return %arg0, %c0_i32 : i32, i32
  }
}

</mosaic_0001>

<bundles_post_ra>
// kernel: tpu_custom_call.1
= control target key start
LH: loop header
LB: loop body
LE: loop exit
PB: predicated region body
PF: predicated region fallthrough
CT: control target
= control target key end

     0   :  { %vm32_vm0 = vcmask 130048   ;;  %vm229_vm1 = vcmask 326656   ;;  %s686_s0 = inlined_call_operand.vmem [shape: f32[16,40], index: 0, kind: input, shape index: {}]   ;;  %s687_s1 = inlined_call_operand.vmem [shape: f32[16,16], index: 1, kind: input, shape index: {}]   ;;  %s688_s2 = inlined_call_operand.vmem [shape: f32[40,32], index: 2, kind: input, shape index: {}]   ;;  %s689_s3 = inlined_call_operand.vmem [shape: f32[16,32], index: 3, kind: input, shape index: {}]   ;;  %s690_s4 = inlined_call_operand.vmem [shape: f32[1,32], index: 4, kind: input, shape index: {}]   ;;  %s691_s5 = inlined_call_operand.hbm [shape: f32[16,32], index: 5, kind: output, shape index: {}]  }
   0x1   :  { %v31_v0 = vld [vmem:[%s689_s3 + $0x8] sm:$0xff]  ;;  %v30_v1 = vld [vmem:[%s689_s3] sm:$0xff]  ;;  %v26_v7 = vld [vmem:[%s688_s2 + $0x18] sm:$0xff] }
   0x2   :  { %v28_v2 = vld [vmem:[%s687_s1] sm:$0xff]  ;;  %v570_v3 = vand.u32 4294901760, %v31_v0  ;;  %v572_v4 = vand.u32 4294901760, %v30_v1  ;;  %v25_v8 = vld [vmem:[%s688_s2 + $0x10] sm:$0xff]  ;;  %v588_v11 = vand.u32 4294901760, %v26_v7  ;;  %v29_v13 = vld [vmem:[%s687_s1 + $0x8] sm:$0xff] }
   0x3   :  { %v34_v5 = vsel %vm32_vm0, %v28_v2, 0  ;;  %v27_v6 = vld [vmem:[%s688_s2 + $0x20] sm:$0xff]  ;;  %v590_v12 = vand.u32 4294901760, %v25_v8  ;;  %v24_v14 = vld [vmem:[%s688_s2 + $0x8] sm:$0xff]  ;;  %v37_v17 = vsel %vm32_vm0, %v29_v13, 0 }
   0x4   :  { %v584_v9 = vand.u32 4294901760, %v34_v5  ;;  %v586_v10 = vand.u32 4294901760, %v27_v6  ;;  %v89_v15 = vsub.f32 %v31_v0, %v570_v3  ;;  %54 = vmatpush.msra.mxu0 %v570_v3  ;;  %v95_v16 = vsub.f32 %v30_v1, %v572_v4  ;;  %155 = vmatpush.msra.mxu3 %v570_v3 }
   0x5   :  { %v603_v18 = vand.u32 4294901760, %v24_v14  ;;  %v610_v21 = vsub.f32 %v26_v7, %v588_v11  ;;  %v612_v22 = vand.u32 4294901760, %v37_v17 }
   0x6   :  { %v58_v19 = vsub.f32 %v34_v5, %v584_v9  ;;  %v607_v20 = vsub.f32 %v27_v6, %v586_v10 }
   0x7   :  { %10 = vsyncpa [#allocation3], 0  ;;  %125 = vmatpush.msra.mxu2 %v89_v15  ;;  %56 = vmatpush.msra.mxu0 %v572_v4  ;;  %v90_v23 = vand.u32 4294901760, %v89_v15  ;;  %v96_v24 = vand.u32 4294901760, %v95_v16  ;;  %v616_v25 = vsub.f32 %v25_v8, %v590_v12  ;;  %v619_v26 = vsub.f32 %v24_v14, %v603_v18  ;;  %v23_v39 = vld [vmem:[%s688_s2] sm:$0xff]  ;;  %v22_v44 = vld [vmem:[%s686_s0 + $0x8] sm:$0xff] }
   0x8   :  { %157 = vmatpush.msra.mxu3 %v572_v4  ;;  %v59_v27 = vand.u32 4294901760, %v58_v19  ;;  %v287_v28 = vand.u32 4294901760, %v607_v20  ;;  %v293_v29 = vand.u32 4294901760, %v610_v21  ;;  %v66_v30 = vsub.f32 %v37_v17, %v612_v22  ;;  %v21_v40 = vld [vmem:[%s686_s0] sm:$0xff]  ;;  %s528_s13 = smov [#allocation2]   ;;  %s486_s16 = sshll.u32 %s691_s5, 4  ;;  %s487_s16 = int_to_ptr.hbm [resolvable:$true] %s486_s16 }
   0x9   :  { %128 = vmatpush.msra.mxu2 %v95_v16  ;;  %v91_v31 = vsub.f32 %v89_v15, %v90_v23  ;;  %188 = vmatpush.msrb.mxu0 %v90_v23  ;;  %v97_v32 = vsub.f32 %v95_v16, %v96_v24  ;;  %v299_v33 = vand.u32 4294901760, %v616_v25  ;;  %v305_v34 = vand.u32 4294901760, %v619_v26  ;;  %s484_s14 = sshll.u32 %s528_s13, 4  ;;  %s529_s17 = smov 128   ;;  %s485_s14 = int_to_ptr.vmem [resolvable:$true] %s484_s14 }
   0xa   :  { %131 = vmatmul.f32.vlgmr.msra.gmra.mxu2 %v58_v19  ;;  %v60_v35 = vsub.f32 %v58_v19, %v59_v27  ;;  %161 = vmatmul.f32.vlgmr.msra.gmra.mxu3 %v59_v27  ;;  %v288_v36 = vsub.f32 %v607_v20, %v287_v28  ;;  %v294_v37 = vsub.f32 %v610_v21, %v293_v29  ;;  %v67_v38 = vand.u32 4294901760, %v66_v30  ;;  %s530_s18 = smov 8  }
   0xb   :  { %248 = vmatpush.msrb.mxu2 %v586_v10  ;;  %v92_v41 = vand.u32 4294901760, %v91_v31  ;;  %v98_v42 = vand.u32 4294901760, %v97_v32  ;;  %v300_v43 = vsub.f32 %v616_v25, %v299_v33  ;;  %192 = vmatpush.msrb.mxu0 %v96_v24  ;;  %v306_v48 = vsub.f32 %v619_v26, %v305_v34 }
   0xc   :  { %v61_v45 = vand.u32 4294901760, %v60_v35  ;;  %v289_v46 = vand.u32 4294901760, %v288_v36  ;;  %v295_v47 = vand.u32 4294901760, %v294_v37  ;;  %v255_v49 = vand.u32 4294901760, %v23_v39 }
   0xd   :  { %93 = vmatpush.msra.mxu1 %v92_v41  ;;  %250 = vmatpush.msrb.mxu2 %v588_v11  ;;  %v231_v50 = vsel %vm229_vm1, %v21_v40, 0  ;;  %v301_v51 = vand.u32 4294901760, %v300_v43  ;;  %v68_v52 = vsub.f32 %v66_v30, %v67_v38  ;;  %v234_v54 = vsel %vm229_vm1, %v22_v44, 0 }
   0xe   :  { %62 = vmatmul.f32.vlgmr.msra.gmra.mxu0 %v61_v45  ;;  %290 = vmatpush.msrb.mxu3 %v289_v46  ;;  %v257_v53 = vand.u32 4294901760, %v231_v50  ;;  %v310_v55 = vsub.f32 %v23_v39, %v255_v49  ;;  %v265_v56 = vand.u32 4294901760, %v234_v54  ;;  %v307_v57 = vand.u32 4294901760, %v306_v48 }
   0xf   :  { %99 = vmatpush.msra.mxu1 %v98_v42  ;;  %252 = vmatpush.msrb.mxu2 %v590_v12  ;;  %v69_v60 = vand.u32 4294901760, %v68_v52  ;;  %v501_v42 = vld [vmem:[%s690_s4] ss:$0 sm:$0xff]  ;;  %vm477_vm3 = vcmask 261120  }
  0x10   :  { %101 = vmatmul.f32.vlgmr.msra.gmra.mxu1 %v584_v9  ;;  %296 = vmatpush.msrb.mxu3 %v295_v47  ;;  %v258_v58 = vsub.f32 %v231_v50, %v257_v53  ;;  %v311_v59 = vand.u32 4294901760, %v310_v55  ;;  %v266_v62 = vsub.f32 %v234_v54, %v265_v56 }
  0x11   :  { %217 = vmatpush.msrb.mxu1 %v570_v3  ;;  %254 = vmatpush.msrb.mxu2 %v603_v18 }
  0x12   :  { %136 = vmatmul.f32.gmra.mxu2 %v66_v30  ;;  %302 = vmatpush.msrb.mxu3 %v301_v51  ;;  %v259_v61 = vand.u32 4294901760, %v258_v58  ;;  %v312_v63 = vsub.f32 %v310_v55, %v311_v59  ;;  %v267_v3 = vand.u32 4294901760, %v266_v62 }
  0x13   :  { %167 = vmatmul.f32.gmra.mxu3 %v67_v38  ;;  %219 = vmatpush.msrb.mxu1 %v572_v4 }
  0x14   :  { %308 = vmatpush.msrb.mxu3 %v307_v57  ;;  %256 = vmatpush.msrb.mxu2 %v255_v49  ;;  %v260_v0 = vsub.f32 %v258_v58, %v259_v61  ;;  %v313_v1 = vand.u32 4294901760, %v312_v63  ;;  %v268_v4 = vsub.f32 %v266_v62, %v267_v3 }
  0x15   :  { %337 = vmatpush.msra.mxu0 %v607_v20  ;;  %373 = vmatpush.msra.mxu1 %v586_v10 }
  0x16   :  { %409 = vmatpush.msra.mxu2 %v287_v28  ;;  %70 = vmatmul.f32.gmra.mxu0 %v69_v60  ;;  %v261_v2 = vand.u32 4294901760, %v260_v0  ;;  %v269_v5 = vand.u32 4294901760, %v268_v4 }
  0x17   :  { %314 = vmatpush.msrb.mxu3 %v313_v1  ;;  %340 = vmatpush.msra.mxu0 %v610_v21 }
  0x18   :  { %413 = vmatpush.msra.mxu2 %v293_v29  ;;  %105 = vmatmul.f32.gmra.mxu1 %v612_v22 }
  0x19   :  { %447 = vmatpush.msra.mxu3 %v586_v10  ;;  %375 = vmatpush.msra.mxu1 %v588_v11 }
  0x1a   :  { %417 = vmatpush.msra.mxu2 %v299_v33  ;;  %343 = vmatpush.msra.mxu0 %v616_v25 }
  0x1b   :  { %262 = vmatmul.f32.vlgmr.msrb.gmra.mxu2 %v261_v2  ;;  %449 = vmatpush.msra.mxu3 %v588_v11 }
  0x1c   :  { %316 = vmatmul.f32.vlgmr.msrb.gmra.mxu3 %v257_v53  ;;  %421 = vmatpush.msra.mxu2 %v305_v34 }
  0x1d   :  { %451 = vmatpush.msra.mxu3 %v590_v12  ;;  %377 = vmatpush.msra.mxu1 %v590_v12 }
  0x1e   :  { %194 = vmatmul.f32.vlgmr.msrb.gmra.mxu0 %v584_v9  ;;  %425 = vmatpush.msra.mxu2 %v311_v59 }
  0x1f   :  { %453 = vmatpush.msra.mxu3 %v603_v18  ;;  %346 = vmatpush.msra.mxu0 %v619_v26 }
  0x20   :  { %221 = vmatmul.f32.vlgmr.msrb.gmra.mxu1 %v584_v9 }
  0x21   :  { %455 = vmatpush.msra.mxu3 %v255_v49  ;;  %379 = vmatpush.msra.mxu1 %v603_v18 }
  0x22   :  { %349 = vmatpush.msra.mxu0 %v310_v55 }
  0x23   :  { %270 = vmatmul.f32.gmra.mxu2 %v269_v5  ;;  %381 = vmatpush.msra.mxu1 %v255_v49 }
  0x24   :  { %320 = vmatmul.f32.gmra.mxu3 %v265_v56 }
  0x26   :  { %198 = vmatmul.f32.gmra.mxu0 %v612_v22 }
  0x28   :  { %225 = vmatmul.f32.gmra.mxu1 %v612_v22 }
  0x2b   :  { %427 = vmatmul.f32.vlgmr.msra.gmra.mxu2 %v257_v53 }
  0x2c   :  { %457 = vmatmul.f32.vlgmr.msra.gmra.mxu3 %v257_v53 }
  0x2e   :  { %352 = vmatmul.f32.vlgmr.msra.gmra.mxu0 %v258_v58 }
  0x30   :  { %385 = vmatmul.f32.vlgmr.msra.gmra.mxu1 %v259_v61 }
  0x33   :  { %431 = vmatmul.f32.gmra.mxu2 %v265_v56 }
  0x34   :  { %461 = vmatmul.f32.gmra.mxu3 %v265_v56 }
  0x36   :  { %357 = vmatmul.f32.gmra.mxu0 %v266_v62 }
  0x38   :  { %391 = vmatmul.f32.gmra.mxu1 %v267_v3 }
  0x8b   :  { %v63_v6 = vpop.f32.mrf.mxu0 }
  0x8d   :  { %v102_v7 = vpop.f32.mrf.mxu1  ;;  %v132_v8 = vpop.f32.mrf.mxu2 }
  0x8e   :  { %v162_v9 = vpop.f32.mrf.mxu3  ;;  %v103_v11 = vadd.f32 %v102_v7, %v63_v6 }
  0x90   :  { %v133_v15 = vadd.f32 %v132_v8, %v103_v11 }
  0x92   :  { %v163_v17 = vadd.f32 %v162_v9, %v133_v15 }
  0x93   :  { %v71_v10 = vpop.f32.mrf.mxu0 }
  0x95   :  { %v106_v12 = vpop.f32.mrf.mxu1  ;;  %v137_v13 = vpop.f32.mrf.mxu2 }
  0x96   :  { %v168_v14 = vpop.f32.mrf.mxu3  ;;  %v107_v18 = vadd.f32 %v106_v12, %v71_v10 }
  0x98   :  { %v138_v23 = vadd.f32 %v137_v13, %v107_v18 }
  0x9a   :  { %v169_v26 = vadd.f32 %v168_v14, %v138_v23 }
  0x9b   :  { %v195_v16 = vpop.f32.mrf.mxu0 }
  0x9c   :  { %v196_v21 = vadd.f32 %v195_v16, %v163_v17 }
  0x9d   :  { %v222_v19 = vpop.f32.mrf.mxu1 }
  0x9e   :  { %v263_v20 = vpop.f32.mrf.mxu2  ;;  %v223_v24 = vadd.f32 %v222_v19, %v196_v21 }
  0x9f   :  { %v317_v22 = vpop.f32.mrf.mxu3 }
  0xa0   :  { %v264_v29 = vadd.f32 %v263_v20, %v223_v24 }
  0xa2   :  { %v318_v32 = vadd.f32 %v317_v22, %v264_v29 }
  0xa3   :  { %v199_v25 = vpop.f32.mrf.mxu0 }
  0xa4   :  { %v200_v30 = vadd.f32 %v199_v25, %v169_v26 }
  0xa5   :  { %v226_v27 = vpop.f32.mrf.mxu1 }
  0xa6   :  { %v271_v28 = vpop.f32.mrf.mxu2  ;;  %v227_v33 = vadd.f32 %v226_v27, %v200_v30 }
  0xa7   :  { %v321_v31 = vpop.f32.mrf.mxu3 }
  0xa8   :  { %v272_v38 = vadd.f32 %v271_v28, %v227_v33 }
  0xaa   :  { %v322_v43 = vadd.f32 %v321_v31, %v272_v38 }
  0xab   :  { %v353_v34 = vpop.f32.mrf.mxu0 }
  0xac   :  { %v354_v35 = vadd.f32 %v353_v34, %v318_v32 }
  0xad   :  { %v386_v36 = vpop.f32.mrf.mxu1 }
  0xae   :  { %v428_v37 = vpop.f32.mrf.mxu2  ;;  %v387_v39 = vadd.f32 %v386_v36, %v354_v35 }
  0xaf   :  { %v458_v40 = vpop.f32.mrf.mxu3 }
  0xb0   :  { %v429_v41 = vadd.f32 %v428_v37, %v387_v39 }
  0xb2   :  { %v459_v44 = vadd.f32 %v458_v40, %v429_v41 }
  0xb3   :  { %v358_v45 = vpop.f32.mrf.mxu0 }
  0xb4   :  { %v469_v46 = vadd.f32 %v501_v42, %v459_v44  ;;  %v359_v47 = vadd.f32 %v358_v45, %v322_v43 }
  0xb5   :  { %v392_v48 = vpop.f32.mrf.mxu1 }
  0xb6   :  { %v432_v49 = vpop.f32.mrf.mxu2  ;;  %vm471_vm2 = vcmp.ge.f32.partialorder %v469_v46, 0.0  ;;  %v473_v50 = vmul.f32 0.01, %v469_v46  ;;  %v393_v51 = vadd.f32 %v392_v48, %v359_v47 }
  0xb7   :  { %v462_v52 = vpop.f32.mrf.mxu3 }
  0xb8   :  { %v475_v53 = vsel %vm471_vm2, %v469_v46, %v473_v50  ;;  %v433_v54 = vadd.f32 %v432_v49, %v393_v51 }
  0xb9   :  { %478 = vst.msk [vmem:[#allocation2] sm:$0xff] %vm477_vm3, %v475_v53 }
  0xba   :  { %v463_v55 = vadd.f32 %v462_v52, %v433_v54 }
  0xbc   :  { %v470_v56 = vadd.f32 %v501_v42, %v463_v55 }
  0xbe   :  { %vm472_vm4 = vcmp.ge.f32.partialorder %v470_v56, 0.0  ;;  %v474_v57 = vmul.f32 0.01, %v470_v56 }
  0xc0   :  { %v476_v58 = vsel %vm472_vm4, %v470_v56, %v474_v57 }
  0xc1   :  { %479 = vst.msk [vmem:[#allocation2 + $0x8] sm:$0xff] %vm477_vm3, %v476_v58 }
  0xc2   :  { %492 = dma.vmem_to_hbm [thread:$0]  %s485_s14, 256, %s487_s16, [#allocation3], %s529_s17, %s529_s17, %s530_s18  }
  0xc3   :  { %526 = dma.done.wait [#allocation3], 256  }
  0xc4   :  { %527 = vsyncadd [#allocation3], 4294967040 }
  0xc5   :  { %497 = vsyncpa [#allocation3], 1 }

</bundles_post_ra>
